<compile_context>
chip_gen: v5e
topology: v5e:2x2
jax: 0.10.0
libtpu: 0.0.40
codegen_flags: <defaults>
</compile_context>

<pallas_src>
import functools

import jax
import jax.numpy as jnp
from jax import lax
from jax.experimental import pallas as pl
from jax.experimental.pallas import tpu as pltpu

_EPS = 1e-6
_LANE = 128
_BLOCK_BUDGET = 12 * 1024 * 1024      # x-block + t-block per pipeline stage
_MIN_VMEM_LIMIT = 32 * 1024 * 1024    # raise v5e's 16 MiB scoped default


def _sublane_multiple(dtype):
    # Required second-minor multiple for a partial block of this dtype.
    return max(8, 32 // jnp.dtype(dtype).itemsize)


# ---------------------------------------------------------------------------
# Fast path: HW % 128 == 0  ->  layout (N, C, S, 128) with S = HW // 128
# ---------------------------------------------------------------------------

def _dice_rows_kernel(x_ref, t_ref, out_ref, acc_ref, *,
                      s_rows, s_tile, num_tiles, handle_edge):
    # x_ref  : (1, C, s_tile, 128) logits (native dtype)
    # t_ref  : (1, s_tile, 128)    integer class indices
    # out_ref: (1, 1, 1, 1)        f32 partial intersection for (chunk, sample)
    # acc_ref: (1, 128)            f32 running per-lane partial sums
    p = pl.program_id(0)
    j = pl.program_id(2)
    tpc = pl.num_programs(2)            # tiles per parallel chunk
    gj = p * tpc + j                    # global S-tile index

    @pl.when(j == 0)
    def _():
        acc_ref[...] = jnp.zeros_like(acc_ref)

    x = x_ref[0].astype(jnp.float32)    # (C, s_tile, 128)
    t = t_ref[0].astype(jnp.int32)      # (s_tile, 128)
    C = x.shape[0]

    # Numerically-stable softmax pieces; channel reductions are elementwise
    # VPU ops over C dense (s_tile, 128) slabs (no cross-sublane XLU reduce).
    m = jnp.max(x, axis=0)              # (s_tile, 128)
    e = jnp.exp(x - m)                  # (C, s_tile, 128)
    s = jnp.sum(e, axis=0)              # (s_tile, 128)

    gathered = jnp.zeros_like(s)        # e[target] without materializing one-hot
    for c in range(C):                  # static unroll: C compare+select+add
        gathered = gathered + jnp.where(t == c, e[c], 0.0)

    r = pl.reciprocal(s, approx=True)   # EUP slot
    r = r * (2.0 - s * r)               # one Newton step -> ~f32 accuracy
    contrib = gathered * r              # softmax prob of the target class

    def accum(v):
        acc_ref[...] += jnp.sum(v, axis=0, keepdims=True)   # (1, 128)

    if handle_edge:
        # Only the last real tile (ragged rows) and chunk-padding tiles pay
        # for the row mask; full tiles take the cheap branch.
        is_edge = gj >= num_tiles - 1

        @pl.when(jnp.logical_not(is_edge))
        def _():
            accum(contrib)

        @pl.when(is_edge)
        def _():
            row = lax.broadcasted_iota(jnp.int32, (s_tile, 128), 0) + gj * s_tile
            accum(jnp.where(row < s_rows, contrib, 0.0))
    else:
        accum(contrib)

    @pl.when(j == tpc - 1)
    def _():
        out_ref[0, 0] = jnp.sum(acc_ref[...], keepdims=True)


def _pick_s_tile(S, C, x_itemsize, t_itemsize, align):
    row_bytes = _LANE * (C * x_itemsize + t_itemsize)
    rows = _BLOCK_BUDGET // max(1, row_bytes)
    rows = max(align, (rows // align) * align)
    return int(min(S, rows))


def _dice_inter_rows(x4, t3, *, s_tile=None):
    """Per-sample intersections for x4=(N, C, S, 128), t3=(N, S, 128)."""
    N, C, S, L = x4.shape
    assert L == _LANE

    align = max(_sublane_multiple(x4.dtype), _sublane_multiple(t3.dtype))
    if s_tile is None:
        s_tile = _pick_s_tile(S, C, x4.dtype.itemsize, t3.dtype.itemsize, align)
    s_tile = int(min(s_tile, S))

    num_tiles = pl.cdiv(S, s_tile)
    # v7x has 2 TensorCores: when N == 1, split the spatial tiles into 2
    # parallel chunks so the second core is not idle.  No-op on v5e/v6e.
    P = 2 if (N == 1 and num_tiles >= 2) else 1
    tiles_per_chunk = pl.cdiv(num_tiles, P)
    may_skip = (P * tiles_per_chunk != num_tiles)
    needs_row_mask = (num_tiles * s_tile != S)

    def s_block(p, j):
        g = p * tiles_per_chunk + j
        if may_skip:                      # chunk-padding tiles: clamp, skip in-kernel
            g = jnp.minimum(g, num_tiles - 1)
        return g

    kernel = functools.partial(
        _dice_rows_kernel, s_rows=S, s_tile=s_tile, num_tiles=num_tiles,
        handle_edge=(needs_row_mask or may_skip))

    row_bytes = _LANE * (C * x4.dtype.itemsize + t3.dtype.itemsize)
    vmem_limit = max(_MIN_VMEM_LIMIT, 2 * row_bytes * s_tile + 4 * 1024 * 1024)

    partial = pl.pallas_call(
        kernel,
        out_shape=jax.ShapeDtypeStruct((P, N, 1, 1), jnp.float32),
        grid_spec=pltpu.PrefetchScalarGridSpec(
            num_scalar_prefetch=0,
            grid=(P, N, tiles_per_chunk),          # reduction (S) axis innermost
            in_specs=[
                pl.BlockSpec((1, C, s_tile, _LANE),
                             lambda p, n, j: (n, 0, s_block(p, j), 0)),
                pl.BlockSpec((1, s_tile, _LANE),
                             lambda p, n, j: (n, s_block(p, j), 0)),
            ],
            out_specs=pl.BlockSpec((1, 1, 1, 1), lambda p, n, j: (p, n, 0, 0)),
            scratch_shapes=[pltpu.VMEM((1, _LANE), jnp.float32)],
        ),
        compiler_params=pltpu.CompilerParams(
            dimension_semantics=("parallel", "parallel", "arbitrary"),
            vmem_limit_bytes=int(vmem_limit),
        ),
    )(x4, t3)

    return partial.reshape(P, N).sum(axis=0)       # (N,) intersections


# ---------------------------------------------------------------------------
# Fallback path: HW % 128 != 0  ->  layout (N, C, HW), lane mask on last tile
# ---------------------------------------------------------------------------

def _dice_flat_kernel(x_ref, t_ref, out_ref, acc_ref, *, hw, tile_hw):
    # x_ref: (1, C, tile_hw), t_ref: (1, tile_hw), out_ref: (1,1,1), acc_ref: (1,1)
    j = pl.program_id(1)
    num_j = pl.num_programs(1)

    @pl.when(j == 0)
    def _():
        acc_ref[...] = jnp.zeros_like(acc_ref)

    x = x_ref[0].astype(jnp.float32)               # (C, tile_hw)
    t = t_ref[...].astype(jnp.int32)               # (1, tile_hw)
    C = x.shape[0]

    m = jnp.max(x, axis=0, keepdims=True)          # (1, tile_hw)
    e = jnp.exp(x - m)                             # (C, tile_hw)
    s = jnp.sum(e, axis=0, keepdims=True)          # (1, tile_hw)

    class_ids = lax.broadcasted_iota(jnp.int32, (C, tile_hw), 0)
    gathered = jnp.sum(jnp.where(class_ids == t, e, 0.0), axis=0, keepdims=True)

    r = pl.reciprocal(s, approx=True)
    r = r * (2.0 - s * r)                          # one Newton step
    contrib = gathered * r                         # (1, tile_hw)

    is_last = j == num_j - 1

    @pl.when(jnp.logical_not(is_last))             # full tiles: no mask work
    def _():
        acc_ref[...] += jnp.sum(contrib, keepdims=True)

    @pl.when(is_last)                              # ragged last tile: lane mask
    def _():
        lane = lax.broadcasted_iota(jnp.int32, (1, tile_hw), 1) + j * tile_hw
        acc_ref[...] += jnp.sum(jnp.where(lane < hw, contrib, 0.0), keepdims=True)
        out_ref[0] = acc_ref[...]


def _pick_tile_hw(HW, C, x_itemsize, t_itemsize):
    hw_padded = pl.cdiv(HW, _LANE) * _LANE
    lane_bytes = C * x_itemsize + t_itemsize
    lanes = _BLOCK_BUDGET // max(1, lane_bytes)
    lanes = max(512, (lanes // _LANE) * _LANE)     # >=512-lane floor (HBM roofline)
    return int(min(hw_padded, lanes))


def _dice_inter_flat(x3, t2, *, tile_hw=None):
    """Per-sample intersections for x3=(N, C, HW), t2=(N, HW)."""
    N, C, HW = x3.shape
    if tile_hw is None:
        tile_hw = _pick_tile_hw(HW, C, x3.dtype.itemsize, t2.dtype.itemsize)
    num_hw = pl.cdiv(HW, tile_hw)

    lane_bytes = C * x3.dtype.itemsize + t2.dtype.itemsize
    vmem_limit = max(_MIN_VMEM_LIMIT, 2 * lane_bytes * tile_hw + 4 * 1024 * 1024)

    kernel = functools.partial(_dice_flat_kernel, hw=HW, tile_hw=tile_hw)

    partial = pl.pallas_call(
        kernel,
        out_shape=jax.ShapeDtypeStruct((N, 1, 1), jnp.float32),
        grid_spec=pltpu.PrefetchScalarGridSpec(
            num_scalar_prefetch=0,
            grid=(N, num_hw),                      # reduction (HW) axis innermost
            in_specs=[
                pl.BlockSpec((1, C, tile_hw), lambda n, j: (n, 0, j)),
                pl.BlockSpec((1, tile_hw), lambda n, j: (n, j)),
            ],
            out_specs=pl.BlockSpec((1, 1, 1), lambda n, j: (n, 0, 0)),
            scratch_shapes=[pltpu.VMEM((1, 1), jnp.float32)],
        ),
        compiler_params=pltpu.CompilerParams(
            dimension_semantics=("parallel", "arbitrary"),
            vmem_limit_bytes=int(vmem_limit),
        ),
    )(x3, t2)

    return partial.reshape(N)


# ---------------------------------------------------------------------------
# Public wrapper + reference
# ---------------------------------------------------------------------------

def dice_loss(inputs, targets, *, s_tile=None, tile_hw=None):
    """torchgeometry-style multiclass dice loss.

    inputs : (N, C, H, W) float logits (any float dtype; streamed natively)
    targets: (N, H, W)    integer class indices in [0, C)
    """
    N, C, H, W = inputs.shape
    HW = H * W

    if HW % _LANE == 0:
        # Stream targets in their native (narrow) integer dtype; upcast in-kernel.
        t_dtype = jnp.dtype(targets.dtype)
        if jnp.issubdtype(t_dtype, jnp.integer) and t_dtype.itemsize <= 4:
            t = targets
        else:
            t = targets.astype(jnp.int32)
        inter = _dice_inter_rows(inputs.reshape(N, C, HW // _LANE, _LANE),
                                 t.reshape(N, HW // _LANE, _LANE),
                                 s_tile=s_tile)
    else:
        t = targets.astype(jnp.int32)
        inter = _dice_inter_flat(inputs.reshape(N, C, HW),
                                 t.reshape(N, HW),
                                 tile_hw=tile_hw)

    # cardinality = sum(soft) + sum(onehot) = 2*HW (softmax rows sum to 1).
    dice = 2.0 * inter / (2.0 * HW + _EPS)
    return jnp.mean(1.0 - dice)


def _dice_loss_ref(inputs, targets):
    # Pure-JAX reference of the torchgeometry dice loss (for sanity check).
    N, C, H, W = inputs.shape
    soft = jax.nn.softmax(inputs.astype(jnp.float32), axis=1)
    onehot = jax.nn.one_hot(targets, C, axis=1, dtype=jnp.float32)
    dims = (1, 2, 3)
    inter = jnp.sum(soft * onehot, axis=dims)
    card = jnp.sum(soft + onehot, axis=dims)
    dice = 2.0 * inter / (card + _EPS)
    return jnp.mean(1.0 - dice)


if __name__ == "__main__":
    keys = jax.random.split(jax.random.PRNGKey(0), 10)

    def check(name, inputs, targets, atol=1e-5, **kw):
        loss = jax.block_until_ready(dice_loss(inputs, targets, **kw))
        ref = _dice_loss_ref(inputs, targets)
        assert jnp.allclose(loss, ref, atol=atol, rtol=1e-5), (name, loss, ref)

    # 1) Fast path: HW = 256 (multiple of 128), single S tile.
    x1 = jax.random.normal(keys[0], (2, 4, 16, 16), dtype=jnp.float32)
    t1 = jax.random.randint(keys[1], (2, 16, 16), 0, 4, dtype=jnp.int32)
    check("fast", x1, t1)

    # 2) Fallback path: HW = 400 (not a multiple of 128) -> lane tail mask.
    x2 = jax.random.normal(keys[2], (2, 4, 20, 20), dtype=jnp.float32)
    t2 = jax.random.randint(keys[3], (2, 20, 20), 0, 4, dtype=jnp.int32)
    check("fallback", x2, t2)

    # 3) N == 1: 2-way parallel chunk split with an odd tile count (skip path).
    x3 = jax.random.normal(keys[4], (1, 3, 64, 80), dtype=jnp.float32)
    t3 = jax.random.randint(keys[5], (1, 64, 80), 0, 3, dtype=jnp.int32)
    check("split", x3, t3, s_tile=8)

    # 4) Ragged last S tile -> row mask only on the edge tile.
    x4 = jax.random.normal(keys[6], (2, 4, 48, 64), dtype=jnp.float32)
    t4 = jax.random.randint(keys[7], (2, 48, 64), 0, 4, dtype=jnp.int32)
    check("rowmask", x4, t4, s_tile=16)

    # 5) bf16 logits streamed natively (kernel computes in f32).
    x5 = jax.random.normal(keys[8], (2, 4, 32, 32), dtype=jnp.bfloat16)
    t5 = jax.random.randint(keys[9], (2, 32, 32), 0, 4, dtype=jnp.int32)
    check("bf16", x5, t5, atol=1e-4)

    print("KERNEL_OK")
</pallas_src>

<mosaic_0001>
module attributes {stable_mosaic.version = 11 : i64} {
  func.func @_dice_rows_kernel(%arg0: i32, %arg1: i32, %arg2: i32, %arg3: memref<1x4x2x128xf32, #tpu.memory_space<vmem>>, %arg4: memref<1x2x128xi32, #tpu.memory_space<vmem>>, %arg5: memref<1x1x1x1xf32, #tpu.memory_space<vmem>>, %arg6: memref<1x128xf32, #tpu.memory_space<vmem>>) attributes {dimension_semantics = [#tpu.dimension_semantics<parallel>, #tpu.dimension_semantics<parallel>, #tpu.dimension_semantics<arbitrary>], iteration_bounds = array<i64: 1, 2, 1>, scalar_prefetch = 0 : i64, scratch_operands = 1 : i64, tpu.core_type = #tpu.core_type<tc>, window_params = [{transform_indices = @transform_0, window_bounds = array<i64: 1, 4, 2, 128>}, {transform_indices = @transform_1, window_bounds = array<i64: 1, 2, 128>}, {transform_indices = @transform_2, window_bounds = array<i64: 1, 1, 1, 1>}]} {
    %c0_i32 = arith.constant 0 : i32
    %0 = arith.cmpi eq, %arg2, %c0_i32 : i32
    %1 = arith.extui %0 : i1 to i32
    %c0_i32_0 = arith.constant 0 : i32
    %2 = arith.cmpi ne, %1, %c0_i32_0 : i32
    scf.if %2 {
      %cst_22 = arith.constant 0.000000e+00 : f32
      %56 = vector.broadcast %cst_22 : f32 to vector<1x128xf32>
      %c0_23 = arith.constant 0 : index
      %c0_24 = arith.constant 0 : index
      %57 = vector.load %arg6[%c0_23, %c0_24] : memref<1x128xf32, #tpu.memory_space<vmem>>, vector<1x128xf32>
      tpu.vector_store %arg6[%c0_23, %c0_24], %56 {strides = array<i32>} : memref<1x128xf32, #tpu.memory_space<vmem>>, vector<1x128xf32>,
    } else {
    }
    %c0 = arith.constant 0 : index
    %c0_1 = arith.constant 0 : index
    %c0_2 = arith.constant 0 : index
    %c0_3 = arith.constant 0 : index
    %3 = vector.load %arg3[%c0, %c0_1, %c0_2, %c0_3] : memref<1x4x2x128xf32, #tpu.memory_space<vmem>>, vector<1x4x2x128xf32>
    %4 = vector.shape_cast %3 : vector<1x4x2x128xf32> to vector<4x2x128xf32>
    %c0_4 = arith.constant 0 : index
    %c0_5 = arith.constant 0 : index
    %c0_6 = arith.constant 0 : index
    %5 = vector.load %arg4[%c0_4, %c0_5, %c0_6] : memref<1x2x128xi32, #tpu.memory_space<vmem>>, vector<1x2x128xi32>
    %6 = vector.shape_cast %5 : vector<1x2x128xi32> to vector<2x128xi32>
    %cst = arith.constant dense<0xFF800000> : vector<2x128xf32>
    %7 = vector.multi_reduction <maximumf>, %4, %cst [0] : vector<4x2x128xf32> to vector<2x128xf32>
    %8 = vector.shape_cast %7 : vector<2x128xf32> to vector<1x2x128xf32>
    %9 = vector.broadcast %8 : vector<1x2x128xf32> to vector<4x2x128xf32>
    %10 = arith.subf %4, %9 : vector<4x2x128xf32>
    %11 = math.exp %10 : vector<4x2x128xf32>
    %cst_7 = arith.constant dense<0.000000e+00> : vector<2x128xf32>
    %12 = vector.multi_reduction <add>, %11, %cst_7 [0] : vector<4x2x128xf32> to vector<2x128xf32>
    %cst_8 = arith.constant 0.000000e+00 : f32
    %13 = vector.broadcast %cst_8 : f32 to vector<2x128xf32>
    %c0_i32_9 = arith.constant 0 : i32
    %14 = vector.broadcast %c0_i32_9 : i32 to vector<2x128xi32>
    %15 = arith.cmpi eq, %6, %14 : vector<2x128xi32>
    %16 = vector.extract_strided_slice %11 {offsets = [0, 0, 0], sizes = [1, 2, 128], strides = [1, 1, 1]} : vector<4x2x128xf32> to vector<1x2x128xf32>
    %17 = vector.shape_cast %16 : vector<1x2x128xf32> to vector<2x128xf32>
    %cst_10 = arith.constant 0.000000e+00 : f32
    %18 = vector.broadcast %cst_10 : f32 to vector<2x128xf32>
    %19 = arith.select %15, %17, %18 : vector<2x128xi1>, vector<2x128xf32>
    %20 = arith.addf %13, %19 : vector<2x128xf32>
    %c1_i32 = arith.constant 1 : i32
    %21 = vector.broadcast %c1_i32 : i32 to vector<2x128xi32>
    %22 = arith.cmpi eq, %6, %21 : vector<2x128xi32>
    %23 = vector.extract_strided_slice %11 {offsets = [1, 0, 0], sizes = [1, 2, 128], strides = [1, 1, 1]} : vector<4x2x128xf32> to vector<1x2x128xf32>
    %24 = vector.shape_cast %23 : vector<1x2x128xf32> to vector<2x128xf32>
    %cst_11 = arith.constant 0.000000e+00 : f32
    %25 = vector.broadcast %cst_11 : f32 to vector<2x128xf32>
    %26 = arith.select %22, %24, %25 : vector<2x128xi1>, vector<2x128xf32>
    %27 = arith.addf %20, %26 : vector<2x128xf32>
    %c2_i32 = arith.constant 2 : i32
    %28 = vector.broadcast %c2_i32 : i32 to vector<2x128xi32>
    %29 = arith.cmpi eq, %6, %28 : vector<2x128xi32>
    %30 = vector.extract_strided_slice %11 {offsets = [2, 0, 0], sizes = [1, 2, 128], strides = [1, 1, 1]} : vector<4x2x128xf32> to vector<1x2x128xf32>
    %31 = vector.shape_cast %30 : vector<1x2x128xf32> to vector<2x128xf32>
    %cst_12 = arith.constant 0.000000e+00 : f32
    %32 = vector.broadcast %cst_12 : f32 to vector<2x128xf32>
    %33 = arith.select %29, %31, %32 : vector<2x128xi1>, vector<2x128xf32>
    %34 = arith.addf %27, %33 : vector<2x128xf32>
    %c3_i32 = arith.constant 3 : i32
    %35 = vector.broadcast %c3_i32 : i32 to vector<2x128xi32>
    %36 = arith.cmpi eq, %6, %35 : vector<2x128xi32>
    %37 = vector.extract_strided_slice %11 {offsets = [3, 0, 0], sizes = [1, 2, 128], strides = [1, 1, 1]} : vector<4x2x128xf32> to vector<1x2x128xf32>
    %38 = vector.shape_cast %37 : vector<1x2x128xf32> to vector<2x128xf32>
    %cst_13 = arith.constant 0.000000e+00 : f32
    %39 = vector.broadcast %cst_13 : f32 to vector<2x128xf32>
    %40 = arith.select %36, %38, %39 : vector<2x128xi1>, vector<2x128xf32>
    %41 = arith.addf %34, %40 : vector<2x128xf32>
    %42 = tpu.reciprocal %12 {approx = true} : vector<2x128xf32> -> vector<2x128xf32>
    %43 = arith.mulf %12, %42 : vector<2x128xf32>
    %cst_14 = arith.constant 2.000000e+00 : f32
    %44 = vector.broadcast %cst_14 : f32 to vector<2x128xf32>
    %45 = arith.subf %44, %43 : vector<2x128xf32>
    %46 = arith.mulf %42, %45 : vector<2x128xf32>
    %47 = arith.mulf %41, %46 : vector<2x128xf32>
    %c0_15 = arith.constant 0 : index
    %c0_16 = arith.constant 0 : index
    %48 = vector.load %arg6[%c0_15, %c0_16] : memref<1x128xf32, #tpu.memory_space<vmem>>, vector<1x128xf32>
    %cst_17 = arith.constant dense<0.000000e+00> : vector<128xf32>
    %49 = vector.multi_reduction <add>, %47, %cst_17 [0] : vector<2x128xf32> to vector<128xf32>
    %50 = vector.shape_cast %49 : vector<128xf32> to vector<1x128xf32>
    %51 = arith.addf %48, %50 : vector<1x128xf32>
    %c0_18 = arith.constant 0 : index
    %c0_19 = arith.constant 0 : index
    %52 = vector.load %arg6[%c0_18, %c0_19] : memref<1x128xf32, #tpu.memory_space<vmem>>, vector<1x128xf32>
    tpu.vector_store %arg6[%c0_18, %c0_19], %51 {strides = array<i32>} : memref<1x128xf32, #tpu.memory_space<vmem>>, vector<1x128xf32>,
    %c0_i32_20 = arith.constant 0 : i32
    %53 = arith.cmpi eq, %arg2, %c0_i32_20 : i32
    %54 = arith.extui %53 : i1 to i32
    %c0_i32_21 = arith.constant 0 : i32
    %55 = arith.cmpi ne, %54, %c0_i32_21 : i32
    scf.if %55 {
      %c0_22 = arith.constant 0 : index
      %c0_23 = arith.constant 0 : index
      %56 = vector.load %arg6[%c0_22, %c0_23] : memref<1x128xf32, #tpu.memory_space<vmem>>, vector<1x128xf32>
      %57 = vector.shape_cast %56 : vector<1x128xf32> to vector<1x1x128xf32>
      %cst_24 = arith.constant dense<0.000000e+00> : vector<1xf32>
      %58 = vector.multi_reduction <add>, %57, %cst_24 [1, 2] : vector<1x1x128xf32> to vector<1xf32>
      %59 = vector.shape_cast %58 : vector<1xf32> to vector<1x1x1xf32>
      %60 = vector.extract %59[0, 0, 0] : f32 from vector<1x1x1xf32>
      %61 = vector.broadcast %60 : f32 to vector<1x1xf32>
      %c0_25 = arith.constant 0 : index
      %c0_26 = arith.constant 0 : index
      %c0_27 = arith.constant 0 : index
      %c0_28 = arith.constant 0 : index
      %62 = vector.load %arg5[%c0_25, %c0_26, %c0_27, %c0_28] : memref<1x1x1x1xf32, #tpu.memory_space<vmem>>, vector<1x1x1x1xf32>
      %63 = vector.shape_cast %62 : vector<1x1x1x1xf32> to vector<1x1xf32>
      %64 = vector.shape_cast %61 : vector<1x1xf32> to vector<1x1x1x1xf32>
      tpu.vector_store %arg5[%c0_25, %c0_26, %c0_27, %c0_28], %64 {strides = array<i32>} : memref<1x1x1x1xf32, #tpu.memory_space<vmem>>, vector<1x1x1x1xf32>,
    } else {
    }
    return
  }
  func.func @transform_0(%arg0: i32, %arg1: i32, %arg2: i32) -> (i32, i32, i32, i32) {
    %c1_i32 = arith.constant 1 : i32
    %0 = arith.muli %arg0, %c1_i32 : i32
    %1 = arith.addi %0, %arg2 : i32
    %c0_i32 = arith.constant 0 : i32
    %c0_i32_0 = arith.constant 0 : i32
    %c0_i32_1 = arith.constant 0 : i32
    return %arg1, %c0_i32, %1, %c0_i32_0 : i32, i32, i32, i32
  }
  func.func @transform_1(%arg0: i32, %arg1: i32, %arg2: i32) -> (i32, i32, i32) {
    %c1_i32 = arith.constant 1 : i32
    %0 = arith.muli %arg0, %c1_i32 : i32
    %1 = arith.addi %0, %arg2 : i32
    %c0_i32 = arith.constant 0 : i32
    %c0_i32_0 = arith.constant 0 : i32
    return %arg1, %1, %c0_i32 : i32, i32, i32
  }
  func.func @transform_2(%arg0: i32, %arg1: i32, %arg2: i32) -> (i32, i32, i32, i32) {
    %c0_i32 = arith.constant 0 : i32
    %c0_i32_0 = arith.constant 0 : i32
    %c0_i32_1 = arith.constant 0 : i32
    return %arg0, %arg1, %c0_i32, %c0_i32_0 : i32, i32, i32, i32
  }
}

</mosaic_0001>

<bundles_post_ra>
// kernel: tpu_custom_call.1
= control target key start
LH: loop header
LB: loop body
LE: loop exit
PB: predicated region body
PF: predicated region fallthrough
CT: control target
= control target key end

     0   :  { %7 = vsyncpa [#allocation4], 0  ;;  %s780_s0 = inlined_call_operand.hbm [shape: f32[2,4,2,128], index: 0, kind: input, shape index: {}]   ;;  %s781_s1 = inlined_call_operand.hbm [shape: s32[2,2,128], index: 1, kind: input, shape index: {}]   ;;  %s782_s2 = inlined_call_operand.vmem [shape: f32[1,2,1,1], index: 2, kind: output, shape index: {}]  }
   0x1   :  { %9 = vsyncpa [#allocation4 + $0x1], 0 }
   0x2   :  { %10 = vsyncpa [#allocation6], 0 }
   0x3   :  { %12 = vsyncpa [#allocation6 + $0x1], 0  ;;  %s664_s9 = smov 0   ;;  %s666_s10 = smov 0  }
   0x4   :  { %s668_s11 = smov 0   ;;  %s670_s12 = smov 0  }
   0x5   :  { %s672_s13 = smov 0   ;;  %s674_s14 = smov 0  }
   0x6 LB: > { %s440_s15 = sadd.s32 4294967295, %s644_s14   ;;  %s33_s16 = sadd.s32 1, %s640_s13  ;;  %s644_s14 = sphi %s674_s14, %s18_s14   ;;  %s640_s13 = sphi %s672_s13, %s790_s13   ;;  %s636_s12 = sphi %s670_s12, %s789_s12   ;;  %s632_s11 = sphi %s668_s11, %s788_s11   ;;  %s628_s10 = sphi %s666_s10, %s787_s10   ;;  %s624_s9 = sphi %s664_s9, %s786_s9  }
   0x7   : > { %p35_p0 = scmp.ge.s32.totalorder %s33_s16, 2  ;;  %s48_s17 = sadd.s32 1, %s632_s11 }
   0x8   : > { %p55_p1 = scmp.ne.s32.totalorder %s632_s11, %s628_s10  ;;  %p56_p2 = scmp.eq.s32.totalorder %s644_s14, 0 }
   0x9   : > { %s792_s16 = smov (%p35_p0, %s33_s16), 0  ;;  %p61_p4 = scmp.ne.s32.totalorder %s628_s10, %s624_s9 }
   0xa   : > { %p700_p3 = por %p56_p2, %p55_p1  ;;  %s43_s19 = ssub.s32 %s640_s13, %s792_s16 }
   0xb   : > { %p62_p5 = scmp.eq.s32.totalorder %s440_s15, 0  ;;  %p46_p6 = scmp.eq.s32.totalorder %s43_s19, 0 }
   0xc   : > { %p468_p8 = scmp.lt.s32.totalorder %s644_s14, 2  ;;  %s143_s22 = sand.u32 1, %s632_s11  }
   0xd   : > { %p707_p7 = por %p62_p5, %p61_p4  ;;  %s454_s23 = sshll.u32 %s640_s13, 3 }
   0xe   : > { %s713_s21 = scalar_select %p46_p6, %s632_s11, %s48_s17  }
   0xf   : > { %s444_s24 = sshll.u32 %s143_s22, 3  ;;  %s154_s27 = scalar_lea.hbm %s780_s0, %s454_s23 }
  0x10   : > { %s155_s28 = sshll.u32 %s154_s27, 4  ;;  %s147_s29 = scalar_lea.vmem [#allocation3], %s444_s24  ;;  %s156_s28 = int_to_ptr.hbm [resolvable:$true] %s155_s28 }
  0x11   : > { %s157_s30 = sshll.u32 %s147_s29, 4  ;;  %p722_p9 = pnand %p468_p8, %p700_p3  ;;  %s158_s30 = int_to_ptr.vmem [resolvable:$true] %s157_s30 }
  0x12   : > { %p449_p10 = scmp.ge.s32.totalorder %s644_s14, 1  ;;  %p186_p11 = scmp.lt.s32.totalorder %s644_s14, 3 }
  0x13   : > { %s144_s4 = scalar_lea.sflag [#allocation4], %s143_s22  ;;  %s646_s5 = smov 32  }
  0x14   : > { %s647_s6 = smov 2   ;;  %p187_p12 = pnand %p449_p10, %p186_p11 }
  0x15   : > { %464 = dma.hbm_to_vmem [thread:$0]  (!%p722_p9), %s156_s28, 128, %s158_s30, %s144_s4, %s646_s5, %s646_s5, %s647_s6  }
  0x16   : > { %s447_s7 = sshll.u32 %s143_s22, 1  ;;  %s448_s8 = sshll.u32 %s640_s13, 1 }
  0x17   : > { %s177_s17 = scalar_lea.hbm %s781_s1, %s448_s8  ;;  %s171_s19 = scalar_lea.vmem [#allocation5], %s447_s7 }
  0x18   : > { %s179_s18 = sshll.u32 %s177_s17, 4  ;;  %s181_s23 = sshll.u32 %s171_s19, 4  ;;  %s180_s18 = int_to_ptr.hbm [resolvable:$true] %s179_s18  ;;  %s182_s23 = int_to_ptr.vmem [resolvable:$true] %s181_s23 }
  0x19   : > { %s168_s24 = scalar_lea.sflag [#allocation6], %s143_s22  ;;  %190 = sbr.rel (%p187_p12) target bundleno = 280 (0x118), region = 28 }
  0x1a   : > { %467 = dma.hbm_to_vmem [thread:$0]  (!%p722_p9), %s180_s18, 32, %s182_s23, %s168_s24  }
  0x1b   : > { %s192_s25 = sand.u32 (!%p187_p12), 1, %s628_s10  }
  0x1c   : > { %s450_s26 = sshll.u32 (!%p187_p12), %s192_s25, 3  ;;  %s193_s27 = scalar_lea.sflag (!%p187_p12), [#allocation4], %s192_s25 }
  0x1d   : > { %s196_s28 = scalar_lea.vmem (!%p187_p12), [#allocation3], %s450_s26 }
  0x1e   : > { %615 = dma.done.wait (%p707_p7), %s193_s27, 128  }
  0x1f   : > { %617 = vsyncadd (%p707_p7), %s193_s27, 4294967168  ;;  %s451_s29 = sshll.u32 %s192_s25, 1  ;;  %s203_s30 = scalar_lea.sflag [#allocation6], %s192_s25 }
  0x20   : > { %s741_s4 = scalar_lea.vmem [#allocation5], %s451_s29 }
  0x21   : > { %619 = dma.done.wait (%p707_p7), %s203_s30, 32  }
  0x22   : > { %621 = vsyncadd (%p707_p7), %s203_s30, 4294967264  ;;  %v648_v0 = vmov 0.0   ;;  %vm254_vm0 = vcmask 1041408   ;;  %v249_v1 = vld [vmem:[%s196_s28] sm:$0x3]  ;;  %vm312_vm5 = vcmask 1040384  }
  0x23   : > { %248 = vst [vmem:[#allocation2] sm:$0x1] %v648_v0  ;;  %v250_v2 = vld [vmem:[%s196_s28 + $0x2] sm:$0x3]  ;;  %v251_v3 = vld [vmem:[%s196_s28 + $0x4] sm:$0x3] }
  0x24   : > { %v252_v4 = vld [vmem:[%s196_s28 + $0x6] sm:$0x3]  ;;  %v255_v5 = vsel %vm254_vm0, %v249_v1, -inf  ;;  %v256_v6 = vsel %vm254_vm0, %v250_v2, -inf  ;;  %v257_v7 = vsel %vm254_vm0, %v251_v3, -inf  ;;  %p239_p13 = scmp.lt.s32.totalorder %s636_s12, 1 }
  0x25   : > { %v258_v8 = vsel %vm254_vm0, %v252_v4, -inf  ;;  %v259_v9 = vmax.f32 %v255_v5, %v256_v6  ;;  %v253_v22 = vld [vmem:[%s741_s4] sm:$0x3]  ;;  %vm324_vm6 = vcmask 0  }
  0x26   : > { %v260_v10 = vmax.f32 %v257_v7, %v258_v8  ;;  %vm281_vm1 = vcmp.eq.s32.totalorder %v253_v22, 0  ;;  %vm284_vm2 = vcmp.eq.s32.totalorder %v253_v22, 1  ;;  %vm287_vm3 = vcmp.eq.s32.totalorder %v253_v22, 2  ;;  %s794_s12 = smov (!%p239_p13, %s636_s12), 1 }
  0x27   : > { %vm290_vm4 = vcmp.eq.s32.totalorder %v253_v22, 3  ;;  %s243_s3 = scalar_lea.vmem %s782_s2, %s794_s12 }
  0x28   : > { %v261_v11 = vmax.f32 %v259_v9, %v260_v10 }
  0x2a   : > { %v262_v12 = vsub.f32 %v249_v1, %v261_v11  ;;  %v263_v13 = vsub.f32 %v250_v2, %v261_v11  ;;  %v264_v14 = vsub.f32 %v251_v3, %v261_v11  ;;  %v265_v15 = vsub.f32 %v252_v4, %v261_v11  ;;  %v298_v50 = vld [vmem:[#allocation2] sm:$0x1] }
  0x2c   : > { %v266_v16 = vmul.f32 1.442695, %v262_v12  ;;  %v268_v17 = vmul.f32 1.442695, %v263_v13  ;;  %v270_v18 = vmul.f32 1.442695, %v264_v14 }
  0x2d   : > { %v272_v19 = vmul.f32 1.442695, %v265_v15 }
  0x2e   : > { %520 = vpow2.f32 %v266_v16 }
  0x2f   : > { %522 = vpow2.f32 %v268_v17 }
  0x30   : > { %524 = vpow2.f32 %v270_v18 }
  0x31   : > { %526 = vpow2.f32 %v272_v19 }
  0x34   : > { %v521_v20 = vpop.eup %520 }
  0x35   : > { %v523_v21 = vpop.eup %522  ;;  %v274_v23 = vsel %vm254_vm0, %v521_v20, 0.0  ;;  %v282_v32 = vsel %vm281_vm1, %v521_v20, 0.0 }
  0x36   : > { %v525_v24 = vpop.eup %524  ;;  %v275_v25 = vsel %vm254_vm0, %v523_v21, 0.0  ;;  %v285_v33 = vsel %vm284_vm2, %v523_v21, 0.0 }
  0x37   : > { %v527_v26 = vpop.eup %526  ;;  %v276_v27 = vadd.f32 %v275_v25, %v274_v23  ;;  %v277_v28 = vsel %vm254_vm0, %v525_v24, 0.0  ;;  %v286_v34 = vadd.f32 %v285_v33, %v282_v32  ;;  %v288_v35 = vsel %vm287_vm3, %v525_v24, 0.0 }
  0x38   : > { %v279_v29 = vsel %vm254_vm0, %v527_v26, 0.0  ;;  %v291_v38 = vsel %vm290_vm4, %v527_v26, 0.0 }
  0x39   : > { %v278_v30 = vadd.f32 %v277_v28, %v276_v27  ;;  %v289_v36 = vadd.f32 %v288_v35, %v286_v34 }
  0x3b   : > { %v280_v31 = vadd.f32 %v279_v29, %v278_v30  ;;  %v292_v40 = vadd.f32 %v291_v38, %v289_v36 }
  0x3d   : > { %528 = vrcp.f32 %v280_v31 }
  0x43   : > { %v529_v37 = vpop.eup %528 }
  0x44   : > { %v294_v39 = vmul.f32 %v529_v37, %v280_v31 }
  0x46   : > { %v295_v41 = vsub.f32 2.0, %v294_v39 }
  0x48   : > { %v296_v42 = vmul.f32 %v529_v37, %v295_v41 }
  0x4a   : > { %v297_v43 = vmul.f32 %v296_v42, %v292_v40 }
  0x4c   : > { %v299_v44 = vsel %vm254_vm0, %v297_v43, 0.0 }
  0x4d   : > { %v300_v45 = vrot.slane %v299_v44, 4 }
  0x4f   : > { %v301_v46 = vadd.f32 %v300_v45, %v299_v44 }
  0x51   : > { %v302_v47 = vrot.slane %v301_v46, 2 }
  0x53   : > { %v303_v48 = vadd.f32 %v302_v47, %v301_v46 }
  0x55   : > { %v304_v49 = vrot.slane %v303_v48, 1 }
  0x57   : > { %v305_v51 = vadd.f32 %v304_v49, %v303_v48 }
  0x59   : > { %v306_v52 = vadd.f32 %v305_v51, %v298_v50 }
  0x5b   : > { %307 = vst [vmem:[#allocation2] sm:$0x1] %v306_v52 }
  0x62   : > { %v311_v53 = vld [vmem:[#allocation2] sm:$0x1] }
  0x63   : > { %v313_v54 = vsel %vm312_vm5, %v311_v53, 0.0 }
  0x64   : > { %314 = vadd.xlane.f32.xlu0 %v313_v54 }
  0xd7   : > { %v315_v55 = vpop.xlane.xlu0 %314 }
  0xd8   : > { %v316_v56 = vrot.slane %v315_v55, 4 }
  0xda   : > { %v317_v57 = vadd.f32 %v316_v56, %v315_v55 }
  0xdc   : > { %v318_v58 = vrot.slane %v317_v57, 2 }
  0xde   : > { %v319_v59 = vadd.f32 %v318_v58, %v317_v57 }
  0xe0   : > { %v320_v60 = vrot.slane %v319_v59, 1 }
  0xe2   : > { %v321_v61 = vadd.f32 %v320_v60, %v319_v59 }
  0xe4   : > { %455 = vpush %v321_v61 }
 0x115   : > { %s456_s5 = spop %455 }
 0x116   : > { %v323_v62 = vstv %s456_s5 }
 0x117   : > { %325 = vst.msk [vmem:[%s243_s3] sm:$0x1] %vm324_vm6, %v323_v62 }
 0x118 PF: > { %s18_s14 = sadd.s32 1, %s644_s14   ;;  %s786_s9 = smov %s628_s10 }
 0x119   : > { %p15_p0 = scmp.ge.s32.totalorder %s18_s14, 4   ;;  %s787_s10 = smov %s632_s11 }
 0x11a   : > { %s788_s11 = smov %s713_s21  ;;  %s789_s12 = smov %s640_s13 }
 0x11b   : > { %s790_s13 = smov %s792_s16  ;;  %17 = sbr.rel (!%p15_p0) target bundleno = 6 (0x6), region = 89 }
 0x120   :  { %351 = vsyncpa [#allocation4], 1 }
 0x121   :  { %353 = vsyncpa [#allocation4 + $0x1], 1 }
 0x122   :  { %354 = vsyncpa [#allocation6], 1 }
 0x123   :  { %356 = vsyncpa [#allocation6 + $0x1], 1 }

</bundles_post_ra>
